<compile_context>
chip_gen: v6e
topology: v6e:2x2x1
jax: 0.10.0
libtpu: 0.0.40
codegen_flags: <defaults>
</compile_context>

<pallas_src>
import jax
import jax.numpy as jnp
from jax.experimental import pallas as pl
from jax.experimental.pallas import tpu as pltpu

LANE = 128


def _round_up(n, m):
    return ((n + m - 1) // m) * m


def mlp_kernel(x_ref, w1_ref, b1_ref, w2_ref, b2_ref, o_ref):
    # Layer 1 on the MXU: bf16 activations/weights, f32 accumulation.
    h = jnp.dot(x_ref[...], w1_ref[...], preferred_element_type=jnp.float32)
    # Bias + ReLU on the VPU; b1 is a (1, Hp) row broadcast over the batch tile.
    h = jnp.maximum(h + b1_ref[...], 0.0)
    # Layer 2 (tiny): f32 weights keep the padded-lane math exact.
    out = jnp.dot(h, w2_ref[...], preferred_element_type=jnp.float32)
    o_ref[...] = (out + b2_ref[...]).astype(o_ref.dtype)


def neural_net_forward(x, w1, b1, w2, b2, *, block_b=128):
    """Fused MLP forward.

    x : (B, K) f32
    w1: (K, H) f32, b1: (H,) f32      (weights already transposed vs nn.Linear)
    w2: (H, C) f32, b2: (C,) f32
    Returns (B, C) f32.
    """
    B, K = x.shape
    H = w1.shape[1]
    C = w2.shape[1]

    # Lane-align hidden and output dims. Zero padding is exact: ReLU(0) = 0 and
    # the padded W2 rows/cols contribute nothing to the first C outputs.
    Hp = _round_up(H, LANE)
    Cp = _round_up(C, LANE)

    # bf16 for the big first-layer operands (halves HBM->VMEM bytes, doubles
    # MXU rate); second layer stays f32 (only 128x128x4B = 64 KB).
    w1p = jnp.zeros((K, Hp), jnp.bfloat16).at[:, :H].set(w1.astype(jnp.bfloat16))
    b1p = jnp.zeros((1, Hp), jnp.float32).at[:, :H].set(b1)
    w2p = jnp.zeros((Hp, Cp), jnp.float32).at[:H, :C].set(w2)
    b2p = jnp.zeros((1, Cp), jnp.float32).at[:, :C].set(b2)

    # Batch tiling: pad batch to a multiple of the tile so the grid is exact.
    tb = min(block_b, _round_up(B, 8))
    Bp = _round_up(B, tb)
    x_bf = x.astype(jnp.bfloat16)
    if Bp != B:
        x_bf = jnp.pad(x_bf, ((0, Bp - B), (0, 0)))

    out_padded = pl.pallas_call(
        mlp_kernel,
        out_shape=jax.ShapeDtypeStruct((Bp, Cp), jnp.float32),
        grid_spec=pl.GridSpec(
            grid=(Bp // tb,),
            in_specs=[
                # x streams per batch tile.
                pl.BlockSpec((tb, K), lambda i: (i, 0)),
                # Weights/biases: constant block index -> fetched once,
                # VMEM-resident for the whole grid.
                pl.BlockSpec((K, Hp), lambda i: (0, 0)),
                pl.BlockSpec((1, Hp), lambda i: (0, 0)),
                pl.BlockSpec((Hp, Cp), lambda i: (0, 0)),
                pl.BlockSpec((1, Cp), lambda i: (0, 0)),
            ],
            out_specs=pl.BlockSpec((tb, Cp), lambda i: (i, 0)),
        ),
        compiler_params=pltpu.CompilerParams(
            # Independent batch tiles -> shard across both TensorCores on v7x.
            dimension_semantics=("parallel",),
        ),
    )(x_bf, w1p, b1p, w2p, b2p)

    # Slice back to the logical (B, num_classes) output.
    return out_padded[:B, :C]


def init_params(key, input_size=784, hidden_size=100, num_classes=10):
    # Deterministic init mimicking nn.Linear's uniform(-1/sqrt(fan_in), 1/sqrt(fan_in)).
    k1, k2, k3, k4 = jax.random.split(key, 4)
    bound1 = 1.0 / (input_size ** 0.5)
    bound2 = 1.0 / (hidden_size ** 0.5)
    w1 = jax.random.uniform(k1, (input_size, hidden_size), jnp.float32,
                            minval=-bound1, maxval=bound1)
    b1 = jax.random.uniform(k2, (hidden_size,), jnp.float32,
                            minval=-bound1, maxval=bound1)
    w2 = jax.random.uniform(k3, (hidden_size, num_classes), jnp.float32,
                            minval=-bound2, maxval=bound2)
    b2 = jax.random.uniform(k4, (num_classes,), jnp.float32,
                            minval=-bound2, maxval=bound2)
    return w1, b1, w2, b2


if __name__ == "__main__":
    key = jax.random.PRNGKey(0)
    kx, kp = jax.random.split(key)

    batch = 256                       # exercises the batch-tiled grid (2 tiles of 128)
    input_size, hidden_size, num_classes = 784, 100, 10

    x = jax.random.normal(kx, (batch, input_size), dtype=jnp.float32)
    w1, b1, w2, b2 = init_params(kp, input_size, hidden_size, num_classes)

    out = neural_net_forward(x, w1, b1, w2, b2)
    out = jax.block_until_ready(out)

    # Reference in plain JAX (same math as the PyTorch forward), with the
    # layer-1 inputs rounded to bf16 to match the kernel's storage dtype.
    x_rt = x.astype(jnp.bfloat16).astype(jnp.float32)
    w1_rt = w1.astype(jnp.bfloat16).astype(jnp.float32)
    h_ref = jnp.maximum(
        jnp.matmul(x_rt, w1_rt, precision=jax.lax.Precision.HIGHEST) + b1, 0.0)
    ref = jnp.matmul(h_ref, w2, precision=jax.lax.Precision.HIGHEST) + b2

    assert out.shape == (batch, num_classes)
    assert jnp.allclose(out, ref, atol=5e-3, rtol=5e-3)

    print("KERNEL_OK")
</pallas_src>

<mosaic_0001>
module attributes {stable_mosaic.version = 11 : i64} {
  func.func @mlp_kernel(%arg0: i32, %arg1: memref<128x784xbf16, #tpu.memory_space<vmem>>, %arg2: memref<784x128xbf16, #tpu.memory_space<vmem>>, %arg3: memref<1x128xf32, #tpu.memory_space<vmem>>, %arg4: memref<128x128xf32, #tpu.memory_space<vmem>>, %arg5: memref<1x128xf32, #tpu.memory_space<vmem>>, %arg6: memref<128x128xf32, #tpu.memory_space<vmem>>) attributes {dimension_semantics = [#tpu.dimension_semantics<parallel>], iteration_bounds = array<i64: 2>, scalar_prefetch = 0 : i64, scratch_operands = 0 : i64, tpu.core_type = #tpu.core_type<tc>, window_params = [{transform_indices = @transform_0, window_bounds = array<i64: 128, 784>}, {pipeline_mode = #tpu.pipeline_mode<synchronous>, transform_indices = @transform_1, window_bounds = array<i64: 784, 128>}, {pipeline_mode = #tpu.pipeline_mode<synchronous>, transform_indices = @transform_2, window_bounds = array<i64: 1, 128>}, {pipeline_mode = #tpu.pipeline_mode<synchronous>, transform_indices = @transform_3, window_bounds = array<i64: 128, 128>}, {pipeline_mode = #tpu.pipeline_mode<synchronous>, transform_indices = @transform_4, window_bounds = array<i64: 1, 128>}, {transform_indices = @transform_5, window_bounds = array<i64: 128, 128>}]} {
    %c0 = arith.constant 0 : index
    %c0_0 = arith.constant 0 : index
    %0 = vector.load %arg1[%c0, %c0_0] : memref<128x784xbf16, #tpu.memory_space<vmem>>, vector<128x784xbf16>
    %c0_1 = arith.constant 0 : index
    %c0_2 = arith.constant 0 : index
    %1 = vector.load %arg2[%c0_1, %c0_2] : memref<784x128xbf16, #tpu.memory_space<vmem>>, vector<784x128xbf16>
    %cst = arith.constant dense<0.000000e+00> : vector<128x128xf32>
    %2 = tpu.matmul %0, %1, %cst {dimension_numbers = #tpu.dot_dimension_numbers<[1], [0], [0], [1], [0, 0, 1, 1], [], []>} : vector<128x784xbf16>, vector<784x128xbf16>, vector<128x128xf32> -> vector<128x128xf32>
    %c0_3 = arith.constant 0 : index
    %c0_4 = arith.constant 0 : index
    %3 = vector.load %arg3[%c0_3, %c0_4] : memref<1x128xf32, #tpu.memory_space<vmem>>, vector<1x128xf32>
    %4 = vector.broadcast %3 : vector<1x128xf32> to vector<128x128xf32>
    %5 = arith.addf %2, %4 : vector<128x128xf32>
    %cst_5 = arith.constant 0.000000e+00 : f32
    %6 = vector.broadcast %cst_5 : f32 to vector<128x128xf32>
    %7 = arith.maximumf %5, %6 : vector<128x128xf32>
    %c0_6 = arith.constant 0 : index
    %c0_7 = arith.constant 0 : index
    %8 = vector.load %arg4[%c0_6, %c0_7] : memref<128x128xf32, #tpu.memory_space<vmem>>, vector<128x128xf32>
    %cst_8 = arith.constant dense<0.000000e+00> : vector<128x128xf32>
    %9 = tpu.matmul %7, %8, %cst_8 {dimension_numbers = #tpu.dot_dimension_numbers<[1], [0], [0], [1], [0, 0, 1, 1], [], []>} : vector<128x128xf32>, vector<128x128xf32>, vector<128x128xf32> -> vector<128x128xf32>
    %c0_9 = arith.constant 0 : index
    %c0_10 = arith.constant 0 : index
    %10 = vector.load %arg5[%c0_9, %c0_10] : memref<1x128xf32, #tpu.memory_space<vmem>>, vector<1x128xf32>
    %11 = vector.broadcast %10 : vector<1x128xf32> to vector<128x128xf32>
    %12 = arith.addf %9, %11 : vector<128x128xf32>
    %c0_11 = arith.constant 0 : index
    %c0_12 = arith.constant 0 : index
    %13 = vector.load %arg6[%c0_11, %c0_12] : memref<128x128xf32, #tpu.memory_space<vmem>>, vector<128x128xf32>
    tpu.vector_store %arg6[%c0_11, %c0_12], %12 {strides = array<i32>} : memref<128x128xf32, #tpu.memory_space<vmem>>, vector<128x128xf32>,
    return
  }
  func.func @transform_0(%arg0: i32) -> (i32, i32) {
    %c0_i32 = arith.constant 0 : i32
    %c0_i32_0 = arith.constant 0 : i32
    return %arg0, %c0_i32 : i32, i32
  }
  func.func @transform_1(%arg0: i32) -> (i32, i32) {
    %c0_i32 = arith.constant 0 : i32
    %c0_i32_0 = arith.constant 0 : i32
    %c0_i32_1 = arith.constant 0 : i32
    return %c0_i32, %c0_i32_0 : i32, i32
  }
  func.func @transform_2(%arg0: i32) -> (i32, i32) {
    %c0_i32 = arith.constant 0 : i32
    %c0_i32_0 = arith.constant 0 : i32
    %c0_i32_1 = arith.constant 0 : i32
    return %c0_i32, %c0_i32_0 : i32, i32
  }
  func.func @transform_3(%arg0: i32) -> (i32, i32) {
    %c0_i32 = arith.constant 0 : i32
    %c0_i32_0 = arith.constant 0 : i32
    %c0_i32_1 = arith.constant 0 : i32
    return %c0_i32, %c0_i32_0 : i32, i32
  }
  func.func @transform_4(%arg0: i32) -> (i32, i32) {
    %c0_i32 = arith.constant 0 : i32
    %c0_i32_0 = arith.constant 0 : i32
    %c0_i32_1 = arith.constant 0 : i32
    return %c0_i32, %c0_i32_0 : i32, i32
  }
  func.func @transform_5(%arg0: i32) -> (i32, i32) {
    %c0_i32 = arith.constant 0 : i32
    %c0_i32_0 = arith.constant 0 : i32
    return %arg0, %c0_i32 : i32, i32
  }
}

</mosaic_0001>

<bundles_post_ra>
// kernel: tpu_custom_call.1
= control target key start
LH: loop header
LB: loop body
LE: loop exit
PB: predicated region body
PF: predicated region fallthrough
CT: control target
= control target key end

     0   :  { %10 = vsyncpa [#allocation3], 0  ;;  %s2949_s0 = inlined_call_operand.vmem [shape: bf16[256,784], index: 0, kind: input, shape index: {}]   ;;  %s2950_s1 = inlined_call_operand.vmem [shape: bf16[784,128], index: 1, kind: input, shape index: {}]   ;;  %s2951_s2 = inlined_call_operand.vmem [shape: f32[1,128], index: 2, kind: input, shape index: {}]   ;;  %s2952_s3 = inlined_call_operand.vmem [shape: f32[128,128], index: 3, kind: input, shape index: {}]   ;;  %s2953_s4 = inlined_call_operand.vmem [shape: f32[1,128], index: 4, kind: input, shape index: {}]   ;;  %s2954_s5 = inlined_call_operand.hbm [shape: f32[256,128], index: 5, kind: output, shape index: {}]  }
   0x1   :  { %12 = vsyncpa [#allocation3 + $0x1], 0  ;;  %s2363_s18 = smov 0   ;;  %s2365_s19 = smov 0  }
   0x2   :  { %s2367_s20 = smov 0   ;;  %s2369_s21 = smov 0  }
   0x3 LB: > { %s2384_s22 = sadd.s32 4294967295, %s2328_s21   ;;  %s1662_s23 = sadd.s32 4294967294, %s2328_s21   ;;  %s2328_s21 = sphi %s2369_s21, %s2986_s21   ;;  %s2324_s20 = sphi %s2367_s20, %s2985_s20   ;;  %s2320_s19 = sphi %s2365_s19, %s2984_s19   ;;  %s2316_s18 = sphi %s2363_s18, %s2983_s18  }
   0x4   : > { %s2388_s24 = sadd.s32 1, %s2328_s21   ;;  %s135_s25 = sadd.s32 1, %s2324_s20 }
   0x5   : > { %s132_s26 = ssub.s32 %s2328_s21, %s2388_s24  ;;  %p145_p0 = scmp.ne.s32.totalorder %s2324_s20, %s2320_s19 }
   0x6   : > { %p133_p1 = scmp.eq.s32.totalorder %s132_s26, 0  ;;  %p146_p2 = scmp.eq.s32.totalorder %s2384_s22, 1 }
   0x7   : > { %p151_p3 = scmp.ne.s32.totalorder %s2320_s19, %s2316_s18  ;;  %p152_p4 = scmp.eq.s32.totalorder %s1662_s23, 1 }
   0x8   : > { %s2399_s27 = scalar_select %p133_p1, %s2324_s20, %s135_s25  }
   0x9   : > { %p2401_p5 = por %p146_p2, %p145_p0  ;;  %p2405_p6 = por %p152_p4, %p151_p3 }
   0xa   : > { %p1665_p7 = scmp.ge.s32.totalorder %s2328_s21, 1  ;;  %p192_p8 = scmp.lt.s32.totalorder %s2328_s21, 3 }
   0xc   : > { %p193_p9 = pnand %p1665_p7, %p192_p8 }
   0xe   : > { %196 = sbr.rel (%p193_p9) target bundleno = 590 (0x24e), region = 40 }
  0x13   : > { %v2139_v0 = vld [vmem:[%s2950_s1 + $0x78] sm:$0xff]   ;;  %v2143_v4 = vld [vmem:[%s2950_s1 + $0x70] sm:$0xff]   ;;  %v2147_v8 = vld [vmem:[%s2950_s1 + $0x68] sm:$0xff]   ;;  %s1667_s17 = sshll.u32 %s2384_s22, 4  ;;  %vm973_vm0 = vcmask 130048   ;;  %s218_s23 = sand.u32 1, %s2320_s19  }
  0x14   : > { %v2140_v1 = vld [vmem:[%s2950_s1 + $0x38] sm:$0xff]   ;;  %1790 = vmatprep.subr.bf16.mxu0 %v2139_v0  ;;  %v2144_v5 = vld [vmem:[%s2950_s1 + $0x30] sm:$0xff]   ;;  %v2148_v9 = vld [vmem:[%s2950_s1 + $0x28] sm:$0xff]   ;;  %p222_p10 = scmp.lt.s32.totalorder %s1667_s17, 31  ;;  %s1789_s7 = sshll.u32 %s2384_s22, 11 }
  0x15   : > { %v2141_v2 = vld [vmem:[%s2950_s1 + $0xf8] sm:$0xff]   ;;  %1791 = vmatpush3.bf16.msra.mxu0 %v2140_v1  ;;  %v2145_v6 = vld [vmem:[%s2950_s1 + $0xf0] sm:$0xff]   ;;  %v2149_v10 = vld [vmem:[%s2950_s1 + $0xe8] sm:$0xff]   ;;  %s2901_s11 = scalar_lea.hbm %s2954_s5, %s1789_s7  ;;  %s2330_s12 = smov [#allocation2]  }
  0x16   : > { %v2142_v3 = vld [vmem:[%s2950_s1 + $0xb8] sm:$0xff]   ;;  %1854 = vmatprep.subr.bf16.mxu1 %v2141_v2  ;;  %1792 = vmatprep.subr.bf16.mxu0 %v2143_v4  ;;  %v2146_v7 = vld [vmem:[%s2950_s1 + $0xb0] sm:$0xff]   ;;  %v2150_v11 = vld [vmem:[%s2950_s1 + $0xa8] sm:$0xff]   ;;  %s2988_s17 = smov (!%p222_p10, %s1667_s17), 31  ;;  %s2272_s13 = sshll.u32 %s2330_s12, 4  ;;  %s2273_s13 = int_to_ptr.vmem [resolvable:$false] %s2272_s13 }
  0x17   : > { %1855 = vmatpush3.bf16.msra.mxu1 %v2142_v3  ;;  %v2151_v12 = vld [vmem:[%s2950_s1 + $0x60] sm:$0xff]   ;;  %v2155_v16 = vld [vmem:[%s2950_s1 + $0x58] sm:$0xff]   ;;  %v2159_v20 = vld [vmem:[%s2950_s1 + $0x50] sm:$0xff]   ;;  %s2097_s9 = smul.u32 28, %s2988_s17  ;;  %s1666_s17 = sshll.u32 %s218_s23, 7 }
  0x18   : > { %1856 = vmatprep.subr.bf16.mxu1 %v2145_v6  ;;  %v2152_v13 = vld [vmem:[%s2950_s1 + $0x20] sm:$0xff]   ;;  %v2156_v17 = vld [vmem:[%s2950_s1 + $0x18] sm:$0xff]   ;;  %v2160_v21 = vld [vmem:[%s2950_s1 + $0x10] sm:$0xff]   ;;  %s2880_s6 = scalar_lea.vmem [#allocation2], %s1666_s17  ;;  %s2274_s14 = scalar_lea.vmem %s2273_s13, 4096 }
  0x19   : > { %1793 = vmatpush3.bf16.msra.mxu0 %v2144_v5  ;;  %v2153_v14 = vld [vmem:[%s2950_s1 + $0xe0] sm:$0xff]   ;;  %v2157_v18 = vld [vmem:[%s2950_s1 + $0xd8] sm:$0xff]   ;;  %v2161_v22 = vld [vmem:[%s2950_s1 + $0xd0] sm:$0xff]   ;;  %s2502_s26 = scalar_lea.vmem %s2949_s0, %s2097_s9  ;;  %s1600_s8 = sshll.u32 %s2880_s6, 4  ;;  %s2903_s8 = int_to_ptr.vmem [resolvable:$true] %s1600_s8 }
  0x1a   : > { %1794 = vmatprep.subr.bf16.mxu0 %v2147_v8  ;;  %v2154_v15 = vld [vmem:[%s2950_s1 + $0xa0] sm:$0xff]   ;;  %v2158_v19 = vld [vmem:[%s2950_s1 + $0x98] sm:$0xff]   ;;  %v2162_v23 = vld [vmem:[%s2950_s1 + $0x90] sm:$0xff]   ;;  %s2268_s22 = scalar_lea.vmem %s2903_s8, 2048  ;;  %p2275_p0 = scmp.lt.s32.totalorder %s2903_s8, %s2273_s13 }
  0x1b   : > { %1857 = vmatpush3.bf16.msra.mxu1 %v2146_v7  ;;  %v2163_v24 = vld [vmem:[%s2950_s1 + $0x48] sm:$0xff]   ;;  %v2167_v28 = vld [vmem:[%s2950_s1 + $0x40] sm:$0xff]   ;;  %v2174_v34 = vld [vmem:[%s2950_s1 + $0x178] sm:$0xff]   ;;  %p2269_p11 = scmp.ne.s32.totalorder %s2903_s8, %s2268_s22  ;;  %p2276_p1 = scmp.lt.s32.totalorder %s2274_s14, %s2268_s22 }
  0x1c   : > { %1858 = vmatprep.subr.bf16.mxu1 %v2149_v10  ;;  %v2164_v25 = vld [vmem:[%s2950_s1 + $0x8] sm:$0xff]   ;;  %v2168_v29 = vld [vmem:[%s2950_s1] sm:$0xff]   ;;  %v2178_v37 = vld [vmem:[%s2950_s1 + $0x138] sm:$0xff]  }
  0x1d   : > { %1795 = vmatpush3.bf16.msra.mxu0 %v2148_v9  ;;  %v2165_v26 = vld [vmem:[%s2950_s1 + $0xc8] sm:$0xff]   ;;  %v2169_v30 = vld [vmem:[%s2950_s1 + $0xc0] sm:$0xff]   ;;  %v2179_v38 = vld [vmem:[%s2502_s26 + $0x3c] ss:$28 sps:$4 sm:$0xff]   ;;  %p2270_p12 = pnand %p2269_p11, %p2401_p5  ;;  %p2277_p2 = por %p2276_p1, %p2275_p0 }
  0x1e   : > { %1796 = vmatprep.subr.bf16.mxu0 %v2151_v12  ;;  %v2166_v27 = vld [vmem:[%s2950_s1 + $0x88] sm:$0xff]   ;;  %v2170_v31 = vld [vmem:[%s2502_s26] ss:$28 sps:$4 sm:$0xff]   ;;  %v2181_v39 = vld [vmem:[%s2502_s26 + $0x38] ss:$28 sps:$4 sm:$0xff]  }
  0x1f   : > { %1859 = vmatpush3.bf16.msra.mxu1 %v2150_v11  ;;  %v2172_v32 = vld [vmem:[%s2502_s26 + $0x4] ss:$28 sps:$4 sm:$0xff]   ;;  %v2177_v36 = vld [vmem:[%s2502_s26 + $0xc] ss:$28 sps:$4 sm:$0xff]   ;;  %v2182_v40 = vld [vmem:[%s2950_s1 + $0x170] sm:$0xff]   ;;  %p2271_p13 = pneg %p2270_p12 }
  0x20   : > { %1860 = vmatprep.subr.bf16.mxu1 %v2153_v14  ;;  %v2173_v33 = vld [vmem:[%s2950_s1 + $0x80] sm:$0xff]   ;;  %1030 = vmatprep.mubr.bf16.mxu0 %v2172_v32  ;;  %v2185_v42 = vld [vmem:[%s2950_s1 + $0x130] sm:$0xff]   ;;  %v2190_v45 = vld [vmem:[%s2950_s1 + $0x168] sm:$0xff]  }
  0x21   : > { %1797 = vmatpush3.bf16.msra.mxu0 %v2152_v13  ;;  %v2175_v35 = vld [vmem:[%s2502_s26 + $0x8] ss:$28 sps:$4 sm:$0xff]   ;;  %1127 = vmatprep.mubr.bf16.mxu1 %v2177_v36  ;;  %v2186_v43 = vld [vmem:[%s2502_s26 + $0x40] ss:$28 sps:$4 sm:$0xff]   ;;  %v2187_v44 = vld [vmem:[%s2502_s26 + $0x74] ss:$28 sps:$4 sm:$0xff]   ;;  %p2278_p3 = pnand %p2277_p2, %p2271_p13 }
  0x22   : > { %1798 = vmatprep.subr.bf16.mxu0 %v2155_v16  ;;  %v2183_v41 = vld [vmem:[%s2502_s26 + $0x44] ss:$28 sps:$4 sm:$0xff]   ;;  %v2191_v46 = vld [vmem:[%s2502_s26 + $0x7c] ss:$28 sps:$4 sm:$0xff]   ;;  %v2193_v47 = vld [vmem:[%s2950_s1 + $0x128] sm:$0xff]  }
  0x23   : > { %1861 = vmatpush3.bf16.msra.mxu1 %v2154_v15  ;;  %v2189_v48 = vld [vmem:[%s2502_s26 + $0x70] ss:$28 sps:$4 sm:$0xff]   ;;  %v2198_v50 = vld [vmem:[%s2950_s1 + $0x160] sm:$0xff]   ;;  %v2194_v51 = vld [vmem:[%s2502_s26 + $0x78] ss:$28 sps:$4 sm:$0xff]  }
  0x24   : > { %1862 = vmatprep.subr.bf16.mxu1 %v2157_v18  ;;  %v2195_v49 = vld [vmem:[%s2502_s26 + $0xac] ss:$28 sps:$4 sm:$0xff]   ;;  %v2201_v52 = vld [vmem:[%s2950_s1 + $0x120] sm:$0xff]   ;;  %v2199_v53 = vld [vmem:[%s2502_s26 + $0xb4] ss:$28 sps:$4 sm:$0xff]  }
  0x25   : > { %1799 = vmatpush3.bf16.msra.mxu0 %v2156_v17  ;;  %v2206_v54 = vld [vmem:[%s2950_s1 + $0x158] sm:$0xff]   ;;  %v2207_v55 = vld [vmem:[%s2950_s1 + $0x180] sm:$0xff]   ;;  %v2202_v59 = vld [vmem:[%s2502_s26 + $0xb0] ss:$28 sps:$4 sm:$0xff]  }
  0x26   : > { %1800 = vmatprep.subr.bf16.mxu0 %v2159_v20  ;;  %v2197_v56 = vld [vmem:[%s2502_s26 + $0xa8] ss:$28 sps:$4 sm:$0xff]   ;;  %v2210_v57 = vld [vmem:[%s2950_s1 + $0x118] sm:$0xff]   ;;  %v2215_v60 = vld [vmem:[%s2950_s1 + $0x150] sm:$0xff]  }
  0x27   : > { %1863 = vmatpush3.bf16.msra.mxu1 %v2158_v19  ;;  %v2203_v58 = vld [vmem:[%s2502_s26 + $0xe4] ss:$28 sps:$4 sm:$0xff]   ;;  %v2208_v61 = vld [vmem:[%s2502_s26 + $0xec] ss:$28 sps:$4 sm:$0xff]   ;;  %v2218_v62 = vld [vmem:[%s2950_s1 + $0x110] sm:$0xff]  }
  0x28   : > { %1864 = vmatprep.subr.bf16.mxu1 %v2161_v22  ;;  %v2205_v63 = vld [vmem:[%s2502_s26 + $0xe0] ss:$28 sps:$4 sm:$0xff]   ;;  %v2223_v0 = vld [vmem:[%s2950_s1 + $0x148] sm:$0xff]   ;;  %v2214_v7 = vld [vmem:[%s2502_s26 + $0x118] ss:$28 sps:$4 sm:$0xff]  }
  0x29   : > { %1801 = vmatpush3.bf16.msra.mxu0 %v2160_v21  ;;  %v2212_v1 = vld [vmem:[%s2502_s26 + $0x11c] ss:$28 sps:$4 sm:$0xff]   ;;  %v2226_v2 = vld [vmem:[%s2950_s1 + $0x108] sm:$0xff]   ;;  %v2216_v4 = vld [vmem:[%s2502_s26 + $0x124] ss:$28 sps:$4 sm:$0xff]  }
  0x2a   : > { %1802 = vmatprep.subr.bf16.mxu0 %v2163_v24  ;;  %v2211_v3 = vld [vmem:[%s2502_s26 + $0xe8] ss:$28 sps:$4 sm:$0xff]   ;;  %v2220_v8 = vld [vmem:[%s2502_s26 + $0x154] ss:$28 sps:$4 sm:$0xff]   ;;  %v2219_v9 = vld [vmem:[%s2502_s26 + $0x120] ss:$28 sps:$4 sm:$0xff]  }
  0x2b   : > { %1865 = vmatpush3.bf16.msra.mxu1 %v2162_v23  ;;  %v2231_v5 = vld [vmem:[%s2950_s1 + $0x140] sm:$0xff]   ;;  %v2224_v10 = vld [vmem:[%s2502_s26 + $0x15c] ss:$28 sps:$4 sm:$0xff]   ;;  %v2222_v11 = vld [vmem:[%s2502_s26 + $0x150] ss:$28 sps:$4 sm:$0xff]  }
  0x2c   : > { %1866 = vmatprep.subr.bf16.mxu1 %v2165_v26  ;;  %v2234_v6 = vld [vmem:[%s2950_s1 + $0x100] sm:$0xff]   ;;  %v2228_v12 = vld [vmem:[%s2502_s26 + $0x18c] ss:$28 sps:$4 sm:$0xff]   ;;  %v2227_v13 = vld [vmem:[%s2502_s26 + $0x158] ss:$28 sps:$4 sm:$0xff]  }
  0x2d   : > { %1803 = vmatpush3.bf16.msra.mxu0 %v2164_v25  ;;  %v2232_v14 = vld [vmem:[%s2502_s26 + $0x194] ss:$28 sps:$4 sm:$0xff]   ;;  %v2230_v15 = vld [vmem:[%s2502_s26 + $0x188] ss:$28 sps:$4 sm:$0xff]   ;;  %v2248_v25 = vld [vmem:[%s2502_s26 + $0xc0] ss:$28 sps:$4 sm:$0xff]  }
  0x2e   : > { %1804 = vmatprep.subr.bf16.mxu0 %v2167_v28  ;;  %v2238_v16 = vld [vmem:[%s2502_s26 + $0x14] ss:$28 sps:$4 sm:$0xff]   ;;  %v2241_v20 = vld [vmem:[%s2502_s26 + $0x4c] ss:$28 sps:$4 sm:$0xff]   ;;  %v2244_v24 = vld [vmem:[%s2502_s26 + $0x84] ss:$28 sps:$4 sm:$0xff]  }
  0x2f   : > { %1867 = vmatpush3.bf16.msra.mxu1 %v2166_v27  ;;  %v2235_v17 = vld [vmem:[%s2502_s26 + $0x190] ss:$28 sps:$4 sm:$0xff]   ;;  %v2239_v18 = vld [vmem:[%s2502_s26 + $0x18] ss:$28 sps:$4 sm:$0xff]   ;;  %v2247_v22 = vld [vmem:[%s2502_s26 + $0x88] ss:$28 sps:$4 sm:$0xff]  }
  0x30   : > { %1868 = vmatprep.subr.bf16.mxu1 %v2169_v30  ;;  %v2236_v19 = vld [vmem:[%s2502_s26 + $0x10] ss:$28 sps:$4 sm:$0xff]   ;;  %v2243_v23 = vld [vmem:[%s2502_s26 + $0x48] ss:$28 sps:$4 sm:$0xff]   ;;  %v2255_v26 = vld [vmem:[%s2502_s26 + $0xf8] ss:$28 sps:$4 sm:$0xff]  }
  0x31   : > { %1805 = vmatpush3.bf16.msra.mxu0 %v2168_v29  ;;  %v2240_v21 = vld [vmem:[%s2502_s26 + $0x50] ss:$28 sps:$4 sm:$0xff]   ;;  %v2246_v27 = vld [vmem:[%s2502_s26 + $0x80] ss:$28 sps:$4 sm:$0xff]   ;;  %v2263_v30 = vld [vmem:[%s2502_s26 + $0x168] ss:$28 sps:$4 sm:$0xff]  }
  0x32   : > { %1918 = vmatprep.subr.bf16.mxu0 %v2174_v34  ;;  %v2249_v28 = vld [vmem:[%s2502_s26 + $0xbc] ss:$28 sps:$4 sm:$0xff]   ;;  %v2256_v29 = vld [vmem:[%s2502_s26 + $0x130] ss:$28 sps:$4 sm:$0xff]   ;;  %v2259_v36 = vld [vmem:[%s2502_s26 + $0x128] ss:$28 sps:$4 sm:$0xff]  }
  0x33   : > { %1869 = vmatpush3.bf16.msra.mxu1 %v2173_v33  ;;  %v2252_v32 = vld [vmem:[%s2502_s26 + $0xf4] ss:$28 sps:$4 sm:$0xff]   ;;  %v2264_v33 = vld [vmem:[%s2502_s26 + $0x1a0] ss:$28 sps:$4 sm:$0xff]  }
  0x34   : > { %1031 = vmatmul.mubr.bf16.vlgmr.msra.gmra.mxu0 %v2170_v31  ;;  %2023 = vmatprep.subr.bf16.mxu1 %v2207_v55  ;;  %v2251_v31 = vld [vmem:[%s2502_s26 + $0xb8] ss:$28 sps:$4 sm:$0xff]   ;;  %v2254_v34 = vld [vmem:[%s2502_s26 + $0xf0] ss:$28 sps:$4 sm:$0xff]  }
  0x35   : > { %1919 = vmatpush3.bf16.msra.mxu0 %v2178_v37  ;;  %1038 = vmatprep.mubr.bf16.mxu0 %v2179_v38  ;;  %v2260_v37 = vld [vmem:[%s2502_s26 + $0x164] ss:$28 sps:$4 sm:$0xff]  }
  0x36   : > { %1128 = vmatmul.mubr.bf16.vlgmr.msra.gmra.mxu1 %v2175_v35  ;;  %1920 = vmatprep.subr.bf16.mxu0 %v2182_v40  ;;  %v2257_v35 = vld [vmem:[%s2502_s26 + $0x12c] ss:$28 sps:$4 sm:$0xff]   ;;  %v2262_v38 = vld [vmem:[%s2502_s26 + $0x160] ss:$28 sps:$4 sm:$0xff]  }
  0x37   : > { %1135 = vmatprep.mubr.bf16.mxu1 %v2183_v41  ;;  %2024 = vmatpush3.bf16.msra.mxu1 %v2207_v55  ;;  %v1417_v40 = vld [vmem:[%s2952_s3 + $0x78] sm:$0xff]  ;;  %v1416_v41 = vld [vmem:[%s2952_s3 + $0x70] sm:$0xff]  ;;  %v1403_v55 = vld [vmem:[%s2952_s3 + $0x8] sm:$0xff] }
  0x38   : > { %2041 = vmatprep.subr.mxu1 %v1417_v40 }
  0x39   : > { %1921 = vmatpush3.bf16.msra.mxu0 %v2185_v42  ;;  %v1415_v42 = vld [vmem:[%s2952_s3 + $0x68] sm:$0xff] }
  0x3a   : > { %1922 = vmatprep.subr.bf16.mxu0 %v2190_v45  ;;  %v1413_v45 = vld [vmem:[%s2952_s3 + $0x58] sm:$0xff] }
  0x3c   : > { %1039 = vmatmul.mubr.bf16.gmra.mxu0 %v2181_v39  ;;  %v2265_v39 = vld [vmem:[%s2502_s26 + $0x19c] ss:$28 sps:$4 sm:$0xff]  }
  0x3d   : > { %1046 = vmatprep.mubr.bf16.mxu0 %v2187_v44  ;;  %1923 = vmatpush3.bf16.msra.mxu0 %v2193_v47  ;;  %v1414_v44 = vld [vmem:[%s2952_s3 + $0x60] sm:$0xff]  ;;  %v1411_v47 = vld [vmem:[%s2952_s3 + $0x48] sm:$0xff] }
  0x3e   : > { %1136 = vmatmul.mubr.bf16.gmra.mxu1 %v2186_v43  ;;  %1924 = vmatprep.subr.bf16.mxu0 %v2198_v50  ;;  %v2267_v43 = vld [vmem:[%s2502_s26 + $0x198] ss:$28 sps:$4 sm:$0xff]   ;;  %s2909_s26 = scalar_lea.sflag [#allocation3], %s218_s23 }
  0x3f   : > { %1143 = vmatprep.mubr.bf16.mxu1 %v2191_v46  ;;  %v1412_v46 = vld [vmem:[%s2952_s3 + $0x50] sm:$0xff] }
  0x40   : > { %v1408_v50 = vld [vmem:[%s2952_s3 + $0x30] sm:$0xff] }
  0x41   : > { %1925 = vmatpush3.bf16.msra.mxu0 %v2201_v52  ;;  %v1406_v52 = vld [vmem:[%s2952_s3 + $0x20] sm:$0xff] }
  0x42   : > { %1926 = vmatprep.subr.bf16.mxu0 %v2206_v54  ;;  %v1404_v54 = vld [vmem:[%s2952_s3 + $0x10] sm:$0xff] }
  0x44   : > { %1047 = vmatmul.mubr.bf16.gmra.mxu0 %v2189_v48  ;;  %v1410_v48 = vld [vmem:[%s2952_s3 + $0x40] sm:$0xff] }
  0x45   : > { %1054 = vmatprep.mubr.bf16.mxu0 %v2195_v49  ;;  %1927 = vmatpush3.bf16.msra.mxu0 %v2210_v57  ;;  %v1409_v49 = vld [vmem:[%s2952_s3 + $0x38] sm:$0xff] }
  0x46   : > { %1144 = vmatmul.mubr.bf16.gmra.mxu1 %v2194_v51  ;;  %1928 = vmatprep.subr.bf16.mxu0 %v2215_v60  ;;  %v1407_v51 = vld [vmem:[%s2952_s3 + $0x28] sm:$0xff] }
  0x47   : > { %1151 = vmatprep.mubr.bf16.mxu1 %v2199_v53  ;;  %v1405_v53 = vld [vmem:[%s2952_s3 + $0x18] sm:$0xff] }
  0x49   : > { %1929 = vmatpush3.bf16.msra.mxu0 %v2218_v62 }
  0x4a   : > { %1930 = vmatprep.subr.bf16.mxu0 %v2223_v0 }
  0x4c   : > { %1055 = vmatmul.mubr.bf16.gmra.mxu0 %v2197_v56  ;;  %v1402_v56 = vld [vmem:[%s2952_s3] sm:$0xff] }
  0x4d   : > { %1062 = vmatprep.mubr.bf16.mxu0 %v2203_v58  ;;  %1931 = vmatpush3.bf16.msra.mxu0 %v2226_v2 }
  0x4e   : > { %1152 = vmatmul.mubr.bf16.gmra.mxu1 %v2202_v59  ;;  %1932 = vmatprep.subr.bf16.mxu0 %v2231_v5 }
  0x4f   : > { %1159 = vmatprep.mubr.bf16.mxu1 %v2208_v61 }
  0x51   : > { %1933 = vmatpush3.bf16.msra.mxu0 %v2234_v6 }
  0x54   : > { %1063 = vmatmul.mubr.bf16.gmra.mxu0 %v2205_v63 }
  0x55   : > { %1070 = vmatprep.mubr.bf16.mxu0 %v2212_v1 }
  0x56   : > { %1160 = vmatmul.mubr.bf16.gmra.mxu1 %v2211_v3 }
  0x57   : > { %1167 = vmatprep.mubr.bf16.mxu1 %v2216_v4 }
  0x5c   : > { %1071 = vmatmul.mubr.bf16.gmra.mxu0 %v2214_v7 }
  0x5d   : > { %1078 = vmatprep.mubr.bf16.mxu0 %v2220_v8 }
  0x5e   : > { %1168 = vmatmul.mubr.bf16.gmra.mxu1 %v2219_v9 }
  0x5f   : > { %1175 = vmatprep.mubr.bf16.mxu1 %v2224_v10 }
  0x64   : > { %1079 = vmatmul.mubr.bf16.gmra.mxu0 %v2222_v11 }
  0x65   : > { %1086 = vmatprep.mubr.bf16.mxu0 %v2228_v12 }
  0x66   : > { %1176 = vmatmul.mubr.bf16.gmra.mxu1 %v2227_v13 }
  0x67   : > { %1183 = vmatprep.mubr.bf16.mxu1 %v2232_v14 }
  0x6c   : > { %1087 = vmatmul.mubr.bf16.gmra.mxu0 %v2230_v15 }
  0x6d   : > { %1224 = vmatprep.mubr.bf16.mxu0 %v2238_v16 }
  0x6e   : > { %1184 = vmatmul.mubr.bf16.gmra.mxu1 %v2235_v17 }
  0x6f   : > { %2025 = vmatprep.mubr.msk.bf16.mxu1 %vm973_vm0, %v2239_v18 }
  0x74   : > { %1225 = vmatmul.mubr.bf16.vlgmr.msra.gmra.mxu0 %v2236_v19 }
  0x75   : > { %1232 = vmatprep.mubr.bf16.mxu0 %v2241_v20 }
  0x76   : > { %2026 = vmatmul.mubr.msk.bf16.vlgmr.msra.gmra.mxu1 %vm973_vm0, %v2240_v21 }
  0x77   : > { %2029 = vmatprep.mubr.msk.bf16.mxu1 %vm973_vm0, %v2247_v22  ;;  %2042 = vmatpush3.msra.mxu1 %v1417_v40 }
  0x78   : > { %2043 = vmatprep.subr.mxu1 %v1416_v41 }
  0x79   : > { %2044 = vmatpush3.msra.mxu1 %v1416_v41 }
  0x7a   : > { %2045 = vmatprep.subr.mxu1 %v1415_v42 }
  0x7b   : > { %2046 = vmatpush3.msra.mxu1 %v1415_v42 }
  0x7c   : > { %1233 = vmatmul.mubr.bf16.gmra.mxu0 %v2243_v23  ;;  %2047 = vmatprep.subr.mxu1 %v1414_v44 }
  0x7d   : > { %1240 = vmatprep.mubr.bf16.mxu0 %v2244_v24  ;;  %2048 = vmatpush3.msra.mxu1 %v1414_v44 }
  0x7e   : > { %2030 = vmatmul.mubr.msk.bf16.gmra.mxu1 %vm973_vm0, %v2248_v25  ;;  %2049 = vmatprep.subr.mxu1 %v1413_v45 }
  0x7f   : > { %2033 = vmatprep.mubr.msk.bf16.mxu1 %vm973_vm0, %v2255_v26  ;;  %2050 = vmatpush3.msra.mxu1 %v1413_v45 }
  0x80   : > { %2051 = vmatprep.subr.mxu1 %v1412_v46 }
  0x81   : > { %2052 = vmatpush3.msra.mxu1 %v1412_v46 }
  0x82   : > { %2053 = vmatprep.subr.mxu1 %v1411_v47 }
  0x83   : > { %2054 = vmatpush3.msra.mxu1 %v1411_v47 }
  0x84   : > { %1241 = vmatmul.mubr.bf16.gmra.mxu0 %v2246_v27  ;;  %2055 = vmatprep.subr.mxu1 %v1410_v48 }
  0x85   : > { %1248 = vmatprep.mubr.bf16.mxu0 %v2249_v28  ;;  %2056 = vmatpush3.msra.mxu1 %v1410_v48 }
  0x86   : > { %2034 = vmatmul.mubr.msk.bf16.gmra.mxu1 %vm973_vm0, %v2256_v29  ;;  %2057 = vmatprep.subr.mxu1 %v1409_v49 }
  0x87   : > { %2037 = vmatprep.mubr.msk.bf16.mxu1 %vm973_vm0, %v2263_v30  ;;  %2058 = vmatpush3.msra.mxu1 %v1409_v49 }
  0x88   : > { %2059 = vmatprep.subr.mxu1 %v1408_v50 }
  0x89   : > { %2060 = vmatpush3.msra.mxu1 %v1408_v50 }
  0x8a   : > { %2061 = vmatprep.subr.mxu1 %v1407_v51 }
  0x8b   : > { %2062 = vmatpush3.msra.mxu1 %v1407_v51 }
  0x8c   : > { %1249 = vmatmul.mubr.bf16.gmra.mxu0 %v2251_v31  ;;  %2063 = vmatprep.subr.mxu1 %v1406_v52 }
  0x8d   : > { %1256 = vmatprep.mubr.bf16.mxu0 %v2252_v32  ;;  %2064 = vmatpush3.msra.mxu1 %v1406_v52 }
  0x8e   : > { %2038 = vmatmul.mubr.msk.bf16.gmra.mxu1 %vm973_vm0, %v2264_v33  ;;  %2065 = vmatprep.subr.mxu1 %v1405_v53 }
  0x8f   : > { %2066 = vmatpush3.msra.mxu1 %v1405_v53  ;;  %v2787_v53 = vld [vmem:[%s2951_s2] ss:$0 sm:$0xff] }
  0x90   : > { %2067 = vmatprep.subr.mxu1 %v1404_v54 }
  0x91   : > { %2068 = vmatpush3.msra.mxu1 %v1404_v54 }
  0x92   : > { %2069 = vmatprep.subr.mxu1 %v1403_v55 }
  0x93   : > { %2070 = vmatpush3.msra.mxu1 %v1403_v55 }
  0x94   : > { %1257 = vmatmul.mubr.bf16.gmra.mxu0 %v2254_v34  ;;  %2071 = vmatprep.subr.mxu1 %v1402_v56 }
  0x95   : > { %1264 = vmatprep.mubr.bf16.mxu0 %v2257_v35  ;;  %2072 = vmatpush3.msra.mxu1 %v1402_v56 }
  0x9c   : > { %1265 = vmatmul.mubr.bf16.gmra.mxu0 %v2259_v36 }
  0x9d   : > { %1272 = vmatprep.mubr.bf16.mxu0 %v2260_v37 }
  0xa4   : > { %1273 = vmatmul.mubr.bf16.gmra.mxu0 %v2262_v38 }
  0xa5   : > { %1280 = vmatprep.mubr.bf16.mxu0 %v2265_v39 }
  0xac   : > { %1281 = vmatmul.mubr.bf16.gmra.mxu0 %v2267_v43 }
  0xf4   : > { %v1806_v57 = vpop.f32.mrf.mxu0 }
  0xf6   : > { %v1807_v58 = vpop.f32.mrf.mxu0  ;;  %v2676_v59 = vpop.f32.mrf.mxu1 }
  0xf7   : > { %v1808_v51 = vadd.f32 %v1807_v58, %v1806_v57 }
  0xf8   : > { %v2678_v60 = vpop.f32.mrf.mxu0  ;;  %v1871_v61 = vpop.f32.mrf.mxu1 }
  0xfa   : > { %v1810_v62 = vpop.f32.mrf.mxu0  ;;  %v2680_v63 = vpop.f32.mrf.mxu1 }
  0xfc   : > { %v2682_v0 = vpop.f32.mrf.mxu0  ;;  %v2684_v1 = vpop.f32.mrf.mxu1 }
  0xfe   : > { %v1813_v2 = vpop.f32.mrf.mxu0  ;;  %v2686_v3 = vpop.f32.mrf.mxu1 }
 0x100   : > { %v2688_v4 = vpop.f32.mrf.mxu0  ;;  %v2690_v5 = vpop.f32.mrf.mxu1 }
 0x102   : > { %v2692_v6 = vpop.f32.mrf.mxu0  ;;  %v2694_v7 = vpop.f32.mrf.mxu1 }
 0x104   : > { %v2696_v8 = vpop.f32.mrf.mxu0  ;;  %v2698_v9 = vpop.f32.mrf.mxu1 }
 0x106   : > { %v2700_v10 = vpop.f32.mrf.mxu0  ;;  %v2702_v11 = vpop.f32.mrf.mxu1 }
 0x108   : > { %v2704_v12 = vpop.f32.mrf.mxu0  ;;  %v2706_v13 = vpop.f32.mrf.mxu1 }
 0x10a   : > { %v2708_v14 = vpop.f32.mrf.mxu0  ;;  %v2710_v15 = vpop.f32.mrf.mxu1 }
 0x10c   : > { %v2712_v16 = vpop.f32.mrf.mxu0  ;;  %v2714_v17 = vpop.f32.mrf.mxu1 }
 0x10e   : > { %v2716_v18 = vpop.f32.mrf.mxu0  ;;  %v2718_v19 = vpop.f32.mrf.mxu1 }
 0x110   : > { %v2720_v20 = vpop.f32.mrf.mxu0  ;;  %v2722_v21 = vpop.f32.mrf.mxu1 }
 0x112   : > { %v2724_v22 = vpop.f32.mrf.mxu0  ;;  %v2726_v23 = vpop.f32.mrf.mxu1 }
 0x114   : > { %v2728_v24 = vpop.f32.mrf.mxu0  ;;  %v2730_v25 = vpop.f32.mrf.mxu1 }
 0x116   : > { %v2732_v26 = vpop.f32.mrf.mxu0  ;;  %v2734_v27 = vpop.f32.mrf.mxu1 }
 0x118   : > { %v2736_v28 = vpop.f32.mrf.mxu0  ;;  %v2738_v29 = vpop.f32.mrf.mxu1 }
 0x11a   : > { %v2740_v30 = vpop.f32.mrf.mxu0  ;;  %v2742_v31 = vpop.f32.mrf.mxu1 }
 0x11c   : > { %v2744_v32 = vpop.f32.mrf.mxu0  ;;  %v2746_v33 = vpop.f32.mrf.mxu1 }
 0x11e   : > { %v2748_v34 = vpop.f32.mrf.mxu0  ;;  %v2750_v35 = vpop.f32.mrf.mxu1 }
 0x120   : > { %v2752_v36 = vpop.f32.mrf.mxu0  ;;  %v2754_v37 = vpop.f32.mrf.mxu1 }
 0x122   : > { %v2756_v38 = vpop.f32.mrf.mxu0  ;;  %v2758_v39 = vpop.f32.mrf.mxu1 }
 0x124   : > { %v2760_v40 = vpop.f32.mrf.mxu0  ;;  %v2762_v41 = vpop.f32.mrf.mxu1 }
 0x126   : > { %v2764_v42 = vpop.f32.mrf.mxu0  ;;  %v2766_v43 = vpop.f32.mrf.mxu1 }
 0x128   : > { %v2768_v44 = vpop.f32.mrf.mxu0  ;;  %v2770_v45 = vpop.f32.mrf.mxu1 }
 0x129   : > { %2957 = vst [vmem:[#allocation5_spill] sm:$0xff] %v2768_v44  ;;  %2958 = vst [vmem:[#allocation6_spill] sm:$0xff] %v2770_v45 }
 0x12a   : > { %v2772_v46 = vpop.f32.mrf.mxu0  ;;  %v2774_v47 = vpop.f32.mrf.mxu1 }
 0x12b   : > { %2959 = vst [vmem:[#allocation7_spill] sm:$0xff] %v2772_v46  ;;  %2960 = vst [vmem:[#allocation8_spill] sm:$0xff] %v2774_v47  ;;  %v1033_v47 = vadd.f32 %v1808_v51, %v2787_v53 }
 0x12c   : > { %v2776_v48 = vpop.f32.mrf.mxu0  ;;  %v2778_v49 = vpop.f32.mrf.mxu1 }
 0x12d   : > { %2961 = vst [vmem:[#allocation9_spill] sm:$0xff] %v2776_v48  ;;  %2962 = vst [vmem:[#allocation10_spill] sm:$0xff] %v2778_v49  ;;  %v1872_v49 = vadd.f32 %v1871_v61, %v2676_v59  ;;  %v1814_v48 = vadd.f32 %v1813_v2, %v2682_v0  ;;  %v1817_v0 = vadd.f32 %v2692_v6, %v2688_v4 }
 0x12e   : > { %v2780_v50 = vpop.f32.mrf.mxu0  ;;  %v2782_v52 = vpop.f32.mrf.mxu1 }
 0x12f   : > { %2963 = vst [vmem:[#allocation11_spill] sm:$0xff] %v2780_v50  ;;  %2964 = vst [vmem:[#allocation12_spill] sm:$0xff] %v2782_v52  ;;  %v1811_v50 = vadd.f32 %v1810_v62, %v2678_v60  ;;  %v1130_v44 = vadd.f32 %v1872_v49, %v1033_v47  ;;  %v1041_v60 = vadd.f32 %v1814_v48, %v2787_v53 }
 0x130   : > { %v2789_v54 = vpop.f32.mrf.mxu0  ;;  %v2791_v55 = vpop.f32.mrf.mxu1  ;;  %v1878_v62 = vadd.f32 %v2690_v5, %v2686_v3  ;;  %v1881_v3 = vadd.f32 %v2698_v9, %v2694_v7 }
 0x131   : > { %2965 = vst [vmem:[#allocation13_spill] sm:$0xff] %v2789_v54  ;;  %2966 = vst [vmem:[#allocation14_spill] sm:$0xff] %v2791_v55  ;;  %v1036_v54 = vadd.f32 %v1811_v50, %v2787_v53 }
 0x132   : > { %v2793_v56 = vpop.f32.mrf.mxu0  ;;  %v2798_v57 = vpop.f32.mrf.mxu1 }
 0x133   : > { %2967 = vst [vmem:[#allocation15_spill] sm:$0xff] %v2793_v56  ;;  %2968 = vst [vmem:[#allocation16_spill] sm:$0xff] %v2798_v57  ;;  %v1875_v56 = vadd.f32 %v2684_v1, %v2680_v63 }
 0x134   : > { %v1934_v58 = vpop.f32.mrf.mxu0  ;;  %v2800_v52 = vpop.f32.mrf.mxu1 }
 0x135   : > { %2969 = vst [vmem:[#allocation17_spill] sm:$0xff] %v2800_v52  ;;  %v1133_v57 = vadd.f32 %v1875_v56, %v1036_v54 }
 0x136   : > { %v1935_v46 = vpop.f32.mrf.mxu0  ;;  %v2027_v51 = vpop.f32.mrf.mxu1 }
 0x137   : > { %v1936_v55 = vadd.f32 %v1935_v46, %v1934_v58  ;;  %v1138_v58 = vadd.f32 %v1878_v62, %v1041_v60 }
 0x138   : > { %v1937_v45 = vpop.f32.mrf.mxu0  ;;  %v1323_v61 = vpop.f32.mrf.mxu1 }
 0x139   : > { %v1227_v59 = vadd.f32 %v1936_v55, %v1130_v44  ;;  %v1820_v44 = vadd.f32 %v2700_v10, %v2696_v8  ;;  %v1044_v55 = vadd.f32 %v1817_v0, %v2787_v53  ;;  %v1823_v10 = vadd.f32 %v2708_v14, %v2704_v12 }
 0x13a   : > { %v1938_v52 = vpop.f32.mrf.mxu0  ;;  %v2028_v49 = vpop.f32.mrf.mxu1 }
 0x13b   : > { %v1939_v2 = vadd.f32 %v1938_v52, %v1937_v45  ;;  %v1324_v47 = vadd.f32 %v1323_v61, %v1227_v59  ;;  %v1049_v56 = vadd.f32 %v1820_v44, %v2787_v53  ;;  %v1141_v8 = vadd.f32 %v1881_v3, %v1044_v55 }
 0x13c   : > { %v1940_v50 = vpop.f32.mrf.mxu0  ;;  %v1326_v46 = vpop.f32.mrf.mxu1  ;;  %v1890_v44 = vadd.f32 %v2722_v21, %v2718_v19  ;;  %v1893_v19 = vadd.f32 %v2730_v25, %v2726_v23 }
 0x13d   : > { %v1386_v63 = vmax.f32 %v1324_v47, 0.0  ;;  %v1230_v1 = vadd.f32 %v1939_v2, %v1133_v57  ;;  %v1884_v57 = vadd.f32 %v2706_v13, %v2702_v11  ;;  %v1826_v47 = vadd.f32 %v2716_v18, %v2712_v16 }
 0x13e   : > { %v1941_v48 = vpop.f32.mrf.mxu0  ;;  %v2031_v6 = vpop.f32.mrf.mxu1  ;;  %v1887_v11 = vadd.f32 %v2714_v17, %v2710_v15  ;;  %v1829_v18 = vadd.f32 %v2724_v22, %v2720_v20 }
 0x13f   : > { %v1942_v5 = vadd.f32 %v1941_v48, %v1940_v50  ;;  %v1327_v54 = vadd.f32 %v1326_v46, %v1230_v1  ;;  %2073 = vmatprep.mubr.f32.mxu1 %v1386_v63  ;;  %v1146_v2 = vadd.f32 %v1884_v57, %v1049_v56  ;;  %v1052_v63 = vadd.f32 %v1823_v10, %v2787_v53 }
 0x140   : > { %v1943_v4 = vpop.f32.mrf.mxu0  ;;  %v1339_v60 = vpop.f32.mrf.mxu1  ;;  %v1896_v10 = vadd.f32 %v2738_v29, %v2734_v27  ;;  %v1899_v27 = vadd.f32 %v2746_v33, %v2742_v31 }
 0x141   : > { %v1235_v45 = vadd.f32 %v1942_v5, %v1138_v58  ;;  %v1387_v52 = vmax.f32 %v1327_v54, 0.0  ;;  %v1057_v58 = vadd.f32 %v1826_v47, %v2787_v53  ;;  %v1149_v16 = vadd.f32 %v1887_v11, %v1052_v63 }
 0x142   : > { %v1944_v59 = vpop.f32.mrf.mxu0  ;;  %v2032_v1 = vpop.f32.mrf.mxu1 }
 0x143   : > { %v1945_v61 = vadd.f32 %v1944_v59, %v1943_v4  ;;  %2074 = vmatmul.mubr.f32.vlgmr.msra.gmra.mxu1 %v1387_v52  ;;  %v1332_v7 = vadd.f32 %v2027_v51, %v1235_v45  ;;  %v1154_v54 = vadd.f32 %v1890_v44, %v1057_v58  ;;  %v1832_v4 = vadd.f32 %v2732_v26, %v2728_v24 }
 0x144   : > { %v1946_v9 = vpop.f32.mrf.mxu0  ;;  %v1342_v17 = vpop.f32.mrf.mxu1  ;;  %v1060_v52 = vadd.f32 %v1829_v18, %v2787_v53  ;;  %v1835_v26 = vadd.f32 %v2740_v30, %v2736_v28 }
 0x145   : > { %v1238_v62 = vadd.f32 %v1945_v61, %v1141_v8  ;;  %v1388_v0 = vmax.f32 %v1332_v7, 0.0  ;;  %v1065_v8 = vadd.f32 %v1832_v4, %v2787_v53  ;;  %v2972_v4 = vld [vmem:[#allocation7_spill] sm:$0xff] }
 0x146   : > { %v1947_v50 = vpop.f32.mrf.mxu0  ;;  %v2035_v22 = vpop.f32.mrf.mxu1  ;;  %v1157_v24 = vadd.f32 %v1893_v19, %v1060_v52 }
 0x147   : > { %v1948_v13 = vadd.f32 %v1947_v50, %v1946_v9  ;;  %2076 = vmatprep.mubr.f32.mxu1 %v1388_v0  ;;  %v1335_v12 = vadd.f32 %v2028_v49, %v1238_v62  ;;  %v1162_v0 = vadd.f32 %v1896_v10, %v1065_v8  ;;  %v1068_v50 = vadd.f32 %v1835_v26, %v2787_v53 }
 0x148   : > { %v1949_v14 = vpop.f32.mrf.mxu0  ;;  %v1355_v9 = vpop.f32.mrf.mxu1 }
 0x149   : > { %v1243_v51 = vadd.f32 %v1948_v13, %v1146_v2  ;;  %v1389_v46 = vmax.f32 %v1335_v12, 0.0  ;;  %v1838_v2 = vadd.f32 %v2748_v34, %v2744_v32  ;;  %v1902_v12 = vadd.f32 %v2754_v37, %v2750_v35 }
 0x14a   : > { %v1950_v48 = vpop.f32.mrf.mxu0  ;;  %v2036_v63 = vpop.f32.mrf.mxu1  ;;  %v1165_v32 = vadd.f32 %v1899_v27, %v1068_v50  ;;  %v1841_v34 = vadd.f32 %v2756_v38, %v2752_v36  ;;  %v1905_v35 = vadd.f32 %v2762_v41, %v2758_v39 }
 0x14b   : > { %v1951_v55 = vadd.f32 %v1950_v48, %v1949_v14  ;;  %v1340_v3 = vadd.f32 %v1339_v60, %v1243_v51  ;;  %2077 = vmatmul.mubr.f32.gmra.mxu1 %v1389_v46  ;;  %v1073_v13 = vadd.f32 %v1838_v2, %v2787_v53  ;;  %v1844_v48 = vadd.f32 %v2764_v42, %v2760_v40  ;;  %v2971_v42 = vld [vmem:[#allocation5_spill] sm:$0xff] }
 0x14c   : > { %v1952_v15 = vpop.f32.mrf.mxu0  ;;  %v1358_v33 = vpop.f32.mrf.mxu1  ;;  %v1076_v18 = vadd.f32 %v1841_v34, %v2787_v53 }
 0x14d   : > { %v1390_v49 = vmax.f32 %v1340_v3, 0.0  ;;  %v1246_v5 = vadd.f32 %v1951_v55, %v1149_v16  ;;  %v1170_v44 = vadd.f32 %v1902_v12, %v1073_v13 }
 0x14e   : > { %v1953_v45 = vpop.f32.mrf.mxu0  ;;  %v1173_v40 = vadd.f32 %v1905_v35, %v1076_v18 }
 0x14f   : > { %v1954_v21 = vadd.f32 %v1953_v45, %v1952_v15  ;;  %v1343_v56 = vadd.f32 %v1342_v17, %v1246_v5  ;;  %2079 = vmatprep.mubr.f32.mxu1 %v1390_v49  ;;  %v1081_v15 = vadd.f32 %v1844_v48, %v2787_v53  ;;  %v2970_v17 = vld [vmem:[#allocation6_spill] sm:$0xff]  ;;  %v1847_v45 = vadd.f32 %v2972_v4, %v2971_v42 }
 0x150   : > { %v1955_v20 = vpop.f32.mrf.mxu0  ;;  %v1908_v49 = vadd.f32 %v2970_v17, %v2766_v43 }
 0x151   : > { %v1251_v57 = vadd.f32 %v1954_v21, %v1154_v54  ;;  %v1391_v59 = vmax.f32 %v1343_v56, 0.0  ;;  %v2039_v54 = vpop.f32.mrf.mxu1  ;;  %v1084_v43 = vadd.f32 %v1847_v45, %v2787_v53 }
 0x152   : > { %v1956_v61 = vpop.f32.mrf.mxu0  ;;  %v1178_v56 = vadd.f32 %v1908_v49, %v1081_v15  ;;  %v1783_v15 = vld [vmem:[%s2953_s4] ss:$0 sm:$0xff] }
 0x153   : > { %v1957_v7 = vadd.f32 %v1956_v61, %v1955_v20  ;;  %2080 = vmatmul.mubr.f32.gmra.mxu1 %v1391_v59  ;;  %v1348_v23 = vadd.f32 %v2031_v6, %v1251_v57  ;;  %v2973_v20 = vld [vmem:[#allocation9_spill] sm:$0xff]  ;;  %v2974_v57 = vld [vmem:[#allocation11_spill] sm:$0xff]  ;;  %v1371_v10 = vpop.f32.mrf.mxu1  ;;  %v2975_v61 = vld [vmem:[#allocation8_spill] sm:$0xff] }
 0x154   : > { %v1958_v25 = vpop.f32.mrf.mxu0  ;;  %v1850_v59 = vadd.f32 %v2974_v57, %v2973_v20 }
 0x155   : > { %v1254_v60 = vadd.f32 %v1957_v7, %v1157_v24  ;;  %v1392_v62 = vmax.f32 %v1348_v23, 0.0  ;;  %v2976_v24 = vld [vmem:[#allocation10_spill] sm:$0xff]  ;;  %v2040_v50 = vpop.f32.mrf.mxu1 }
 0x156   : > { %v1959_v47 = vpop.f32.mrf.mxu0  ;;  %v1911_v26 = vadd.f32 %v2976_v24, %v2975_v61 }
 0x157   : > { %v1960_v29 = vadd.f32 %v1959_v47, %v1958_v25  ;;  %2082 = vmatprep.mubr.f32.mxu1 %v1392_v62  ;;  %v1351_v28 = vadd.f32 %v2032_v1, %v1254_v60  ;;  %v1089_v60 = vadd.f32 %v1850_v59, %v2787_v53  ;;  %v2977_v62 = vld [vmem:[#allocation12_spill] sm:$0xff] }
 0x158   : > { %v1961_v30 = vpop.f32.mrf.mxu0  ;;  %v1181_v27 = vadd.f32 %v1911_v26, %v1084_v43 }
 0x159   : > { %v1259_v6 = vadd.f32 %v1960_v29, %v1162_v0  ;;  %v1393_v11 = vmax.f32 %v1351_v28, 0.0  ;;  %v2978_v0 = vld [vmem:[#allocation14_spill] sm:$0xff]  ;;  %v2979_v29 = vld [vmem:[#allocation13_spill] sm:$0xff]  ;;  %v2980_v28 = vld [vmem:[#allocation15_spill] sm:$0xff] }
 0x15a   : > { %v1962_v14 = vpop.f32.mrf.mxu0  ;;  %v1914_v2 = vadd.f32 %v2978_v0, %v2977_v62 }
 0x15b   : > { %v1963_v51 = vadd.f32 %v1962_v14, %v1961_v30  ;;  %v1356_v46 = vadd.f32 %v1355_v9, %v1259_v6  ;;  %2083 = vmatmul.mubr.f32.gmra.mxu1 %v1393_v11  ;;  %v1853_v30 = vadd.f32 %v2980_v28, %v2979_v29 }
 0x15c   : > { %v1964_v31 = vpop.f32.mrf.mxu0  ;;  %v1186_v14 = vadd.f32 %v1914_v2, %v1089_v60 }
 0x15d   : > { %v1394_v1 = vmax.f32 %v1356_v46, 0.0  ;;  %v1262_v58 = vadd.f32 %v1963_v51, %v1165_v32  ;;  %v1374_v32 = vpop.f32.mrf.mxu1  ;;  %v1092_v51 = vadd.f32 %v1853_v30, %v2787_v53  ;;  %v2981_v46 = vld [vmem:[#allocation16_spill] sm:$0xff] }
 0x15e   : > { %v1965_v16 = vpop.f32.mrf.mxu0 }
 0x15f   : > { %v1966_v37 = vadd.f32 %v1965_v16, %v1964_v31  ;;  %v1359_v55 = vadd.f32 %v1358_v33, %v1262_v58  ;;  %2085 = vmatprep.mubr.f32.mxu1 %v1394_v1  ;;  %v2982_v31 = vld [vmem:[#allocation17_spill] sm:$0xff] }
 0x160   : > { %v1967_v36 = vpop.f32.mrf.mxu0  ;;  %v1917_v33 = vadd.f32 %v2982_v31, %v2981_v46 }
 0x161   : > { %v1267_v38 = vadd.f32 %v1966_v37, %v1170_v44  ;;  %v1395_v3 = vmax.f32 %v1359_v55, 0.0 }
 0x162   : > { %v1968_v5 = vpop.f32.mrf.mxu0  ;;  %v1189_v35 = vadd.f32 %v1917_v33, %v1092_v51 }
 0x163   : > { %v1969_v52 = vadd.f32 %v1968_v5, %v1967_v36  ;;  %2086 = vmatmul.mubr.f32.gmra.mxu1 %v1395_v3  ;;  %v1364_v39 = vadd.f32 %v2035_v22, %v1267_v38 }
 0x164   : > { %v1970_v41 = vpop.f32.mrf.mxu0 }
 0x165   : > { %v1270_v19 = vadd.f32 %v1969_v52, %v1173_v40  ;;  %v1396_v21 = vmax.f32 %v1364_v39, 0.0 }
 0x166   : > { %v1971_v8 = vpop.f32.mrf.mxu0 }
 0x167   : > { %v1972_v7 = vadd.f32 %v1971_v8, %v1970_v41  ;;  %2088 = vmatprep.mubr.f32.mxu1 %v1396_v21  ;;  %v1367_v23 = vadd.f32 %v2036_v63, %v1270_v19 }
 0x168   : > { %v1973_v25 = vpop.f32.mrf.mxu0 }
 0x169   : > { %v1275_v9 = vadd.f32 %v1972_v7, %v1178_v56  ;;  %v1397_v22 = vmax.f32 %v1367_v23, 0.0 }
 0x16a   : > { %v1974_v47 = vpop.f32.mrf.mxu0 }
 0x16b   : > { %v1372_v6 = vadd.f32 %v1371_v10, %v1275_v9  ;;  %v1975_v11 = vadd.f32 %v1974_v47, %v1973_v25  ;;  %2089 = vmatmul.mubr.f32.gmra.mxu1 %v1397_v22 }
 0x16c   : > { %v1976_v13 = vpop.f32.mrf.mxu0 }
 0x16d   : > { %v1398_v12 = vmax.f32 %v1372_v6, 0.0  ;;  %v1278_v63 = vadd.f32 %v1975_v11, %v1181_v27 }
 0x16e   : > { %v1977_v34 = vpop.f32.mrf.mxu0 }
 0x16f   : > { %v1375_v1 = vadd.f32 %v1374_v32, %v1278_v63  ;;  %v1978_v58 = vadd.f32 %v1977_v34, %v1976_v13  ;;  %2091 = vmatprep.mubr.f32.mxu1 %v1398_v12 }
 0x170   : > { %v1979_v44 = vpop.f32.mrf.mxu0 }
 0x171   : > { %v1399_v48 = vmax.f32 %v1375_v1, 0.0  ;;  %v1283_v16 = vadd.f32 %v1978_v58, %v1186_v14 }
 0x172   : > { %v1980_v18 = vpop.f32.mrf.mxu0 }
 0x173   : > { %v1981_v37 = vadd.f32 %v1980_v18, %v1979_v44  ;;  %2092 = vmatmul.mubr.f32.gmra.mxu1 %v1399_v48  ;;  %v1380_v55 = vadd.f32 %v2039_v54, %v1283_v16 }
 0x175   : > { %v1286_v36 = vadd.f32 %v1981_v37, %v1189_v35  ;;  %v1400_v38 = vmax.f32 %v1380_v55, 0.0 }
 0x177   : > { %2094 = vmatprep.mubr.f32.mxu1 %v1400_v38  ;;  %v1383_v53 = vadd.f32 %v2040_v50, %v1286_v36 }
 0x179   : > { %v1401_v3 = vmax.f32 %v1383_v53, 0.0 }
 0x17b   : > { %2095 = vmatmul.mubr.f32.gmra.mxu1 %v1401_v3 }
 0x203   : > { %v2075_v17 = vpop.f32.mrf.mxu1 }
 0x204   : > { %v1497_v49 = vadd.f32 %v2075_v17, %v1783_v15 }
 0x205   : > { %v1491_v5 = vpop.f32.mrf.mxu1 }
 0x206   : > { %1571 = vst [vmem:[%s2880_s6 + $0x8] sm:$0xff] %v1497_v49  ;;  %v1492_v54 = vadd.f32 %v1783_v15, %v1491_v5 }
 0x208   : > { %1570 = vst [vmem:[%s2880_s6] sm:$0xff] %v1492_v54 }
 0x20b   : > { %v2078_v40 = vpop.f32.mrf.mxu1 }
 0x20c   : > { %v1507_v42 = vadd.f32 %v2078_v40, %v1783_v15 }
 0x20d   : > { %v1501_v4 = vpop.f32.mrf.mxu1 }
 0x20e   : > { %1573 = vst [vmem:[%s2880_s6 + $0x18] sm:$0xff] %v1507_v42  ;;  %v1502_v45 = vadd.f32 %v1783_v15, %v1501_v4 }
 0x210   : > { %1572 = vst [vmem:[%s2880_s6 + $0x10] sm:$0xff] %v1502_v45 }
 0x213   : > { %v2081_v52 = vpop.f32.mrf.mxu1 }
 0x214   : > { %v1517_v39 = vadd.f32 %v2081_v52, %v1783_v15 }
 0x215   : > { %v1511_v41 = vpop.f32.mrf.mxu1 }
 0x216   : > { %1575 = vst [vmem:[%s2880_s6 + $0x28] sm:$0xff] %v1517_v39  ;;  %v1512_v19 = vadd.f32 %v1783_v15, %v1511_v41 }
 0x218   : > { %1574 = vst [vmem:[%s2880_s6 + $0x20] sm:$0xff] %v1512_v19 }
 0x21b   : > { %v2084_v21 = vpop.f32.mrf.mxu1 }
 0x21c   : > { %v1527_v56 = vadd.f32 %v2084_v21, %v1783_v15 }
 0x21d   : > { %v1521_v20 = vpop.f32.mrf.mxu1 }
 0x21e   : > { %1577 = vst [vmem:[%s2880_s6 + $0x38] sm:$0xff] %v1527_v56  ;;  %v1522_v57 = vadd.f32 %v1783_v15, %v1521_v20 }
 0x220   : > { %1576 = vst [vmem:[%s2880_s6 + $0x30] sm:$0xff] %v1522_v57 }
 0x223   : > { %v2087_v59 = vpop.f32.mrf.mxu1 }
 0x224   : > { %v1537_v8 = vadd.f32 %v2087_v59, %v1783_v15 }
 0x225   : > { %v1531_v10 = vpop.f32.mrf.mxu1 }
 0x226   : > { %1579 = vst [vmem:[%s2880_s6 + $0x48] sm:$0xff] %v1537_v8  ;;  %v1532_v43 = vadd.f32 %v1783_v15, %v1531_v10 }
 0x228   : > { %1578 = vst [vmem:[%s2880_s6 + $0x40] sm:$0xff] %v1532_v43 }
 0x22b   : > { %v2090_v61 = vpop.f32.mrf.mxu1 }
 0x22c   : > { %v1547_v24 = vadd.f32 %v2090_v61, %v1783_v15 }
 0x22d   : > { %v1541_v26 = vpop.f32.mrf.mxu1 }
 0x22e   : > { %1581 = vst [vmem:[%s2880_s6 + $0x58] sm:$0xff] %v1547_v24  ;;  %v1542_v7 = vadd.f32 %v1783_v15, %v1541_v26 }
 0x230   : > { %1580 = vst [vmem:[%s2880_s6 + $0x50] sm:$0xff] %v1542_v7 }
 0x233   : > { %v2093_v23 = vpop.f32.mrf.mxu1 }
 0x234   : > { %v1557_v25 = vadd.f32 %v2093_v23, %v1783_v15 }
 0x235   : > { %v1551_v9 = vpop.f32.mrf.mxu1 }
 0x236   : > { %1583 = vst [vmem:[%s2880_s6 + $0x68] sm:$0xff] %v1557_v25  ;;  %v1552_v22 = vadd.f32 %v1783_v15, %v1551_v9 }
 0x238   : > { %1582 = vst [vmem:[%s2880_s6 + $0x60] sm:$0xff] %v1552_v22 }
 0x23b   : > { %v2096_v60 = vpop.f32.mrf.mxu1 }
 0x23c   : > { %v1567_v62 = vadd.f32 %v2096_v60, %v1783_v15 }
 0x23d   : > { %v1561_v0 = vpop.f32.mrf.mxu1 }
 0x23e   : > { %1585 = vst [vmem:[%s2880_s6 + $0x78] sm:$0xff] %v1567_v62  ;;  %v1562_v2 = vadd.f32 %v1783_v15, %v1561_v0 }
 0x240   : > { %1584 = vst [vmem:[%s2880_s6 + $0x70] sm:$0xff] %v1562_v2 }
 0x241   : > { %2281 = shalt.err (!%p2278_p3)
}
 0x242   : > { %s2282_s15 = scalar_lea.hbm %s2901_s11, 2048  ;;  %s2286_s17 = scalar_lea.hbm %s2954_s5, 4096 }
 0x243   : > { %p2283_p4 = scmp.ne.s32.totalorder %s2901_s11, %s2282_s15  ;;  %p2287_p9 = scmp.lt.s32.totalorder %s2901_s11, %s2954_s5 }
 0x244   : > { %p2288_p10 = scmp.lt.s32.totalorder %s2286_s17, %s2282_s15 }
 0x245   : > { %p2284_p7 = pnand %p2283_p4, %p2401_p5 }
 0x246   : > { %p2289_p11 = por %p2288_p10, %p2287_p9 }
 0x247   : > { %p2285_p8 = pneg %p2284_p7 }
 0x249   : > { %p2290_p12 = pnand %p2289_p11, %p2285_p8 }
 0x24b   : > { %2293 = shalt.err (!%p2290_p12)
}
 0x24c   : > { %s2331_s6 = smov 128   ;;  %s2332_s7 = smov 8  }
 0x24d   : > { %2098 = dma.vmem_to_hbm [thread:$0]  (%p2401_p5), %s2903_s8, 2048, %s2901_s11, %s2909_s26, %s2331_s6, %s2331_s6, %s2332_s7  }
 0x24e PF: > { %p2104_p13 = scmp.ge.s32.totalorder %s2328_s21, 2  ;;  %s1615_s9 = sand.u32 1, %s2316_s18  }
 0x24f   : > { %s1616_s10 = scalar_lea.sflag [#allocation3], %s1615_s9 }
 0x250   : > { %p2101_p0 = pnand %p2104_p13, %p2405_p6 }
 0x252   : > { %p2102_p1 = pneg %p2101_p0 }
 0x254   : > { %2311 = dma.done.wait (%p2102_p1), %s1616_s10, 2048  }
 0x255   : > { %2313 = vsyncadd (%p2102_p1), %s1616_s10, 4294965248  ;;  %p15_p2 = scmp.ge.s32.totalorder %s2388_s24, 4   ;;  %s2983_s18 = smov %s2320_s19 }
 0x256   : > { %s2984_s19 = smov %s2324_s20  ;;  %s2985_s20 = smov %s2399_s27 }
 0x257   : > { %s2986_s21 = smov %s2388_s24  ;;  %17 = sbr.rel (!%p15_p2) target bundleno = 3 (0x3), region = 75 }
 0x25c   :  { %1621 = vsyncpa [#allocation3], 1 }
 0x25d   :  { %1623 = vsyncpa [#allocation3 + $0x1], 1 }

</bundles_post_ra>
